<compile_context>
chip_gen: v7x
topology: tpu7x:2x2x1
jax: 0.10.0
libtpu: 0.0.40
codegen_flags: <defaults>
</compile_context>

<pallas_src>
import functools

import jax
import jax.numpy as jnp
from jax.experimental import pallas as pl
from jax.experimental.pallas import tpu as pltpu

_MAX_OUTSTANDING_DMAS = 4        # a few large DMAs in flight saturate HBM bandwidth
_MIN_DMA_CHUNK_BYTES = 1 << 20   # do not split a copy into chunks smaller than 1 MiB
_SMALL_BYPASS_BYTES = 1 << 20    # below this, a Pallas launch is pure overhead


def _dma_copy_kernel(x_hbm, o_hbm, sem, *, chunk_bounds):
    """Chunked HBM->HBM copy: start all DMAs (overlapped), then wait for all.

    `chunk_bounds` is a static tuple of (start_row, num_rows) Python ints, so
    every DMA descriptor is fully static and each chunk is contiguous memory.
    """
    copies = []
    for idx, (start, size) in enumerate(chunk_bounds):
        cp = pltpu.make_async_copy(
            x_hbm.at[pl.ds(start, size), :],
            o_hbm.at[pl.ds(start, size), :],
            sem.at[idx],
        )
        cp.start()
        copies.append(cp)
    for cp in copies:
        cp.wait()


def _choose_flat_shape(x):
    """Flatten x to a 2D (rows, cols) slab.

    Prefer the largest multiple of 128 (capped at 4096 so there are enough
    rows left for chunking) that divides the total element count; fall back to
    the natural last dim. The DMA is contiguous either way, so this only
    affects alignment/chunking, never correctness.
    """
    total = int(x.size)
    cols = 0
    cand = (min(total, 4096) // 128) * 128
    while cand >= 128:
        if total % cand == 0:
            cols = cand
            break
        cand -= 128
    if cols == 0:
        cols = int(x.shape[-1])
    return total // cols, cols


def _plan_chunks(rows, cols, itemsize):
    """Split `rows` into up to _MAX_OUTSTANDING_DMAS contiguous row chunks."""
    total_bytes = rows * cols * itemsize
    n = min(_MAX_OUTSTANDING_DMAS, rows, max(1, total_bytes // _MIN_DMA_CHUNK_BYTES))
    n = max(1, int(n))
    base, rem = divmod(rows, n)
    bounds = []
    start = 0
    for i in range(n):
        size = base + (1 if i < rem else 0)
        bounds.append((start, size))
        start += size
    return tuple(bounds)


def pass_through_copy(x, *, donate=False, force_kernel=False):
    """Explicit materialized copy of `x`.

    Only use when a new HBM buffer is genuinely required; the embedder's
    default path returns `x` directly. With donate=True the caller hands over
    its buffer, which makes the copy a semantic no-op -> skip the kernel
    (an aliased pallas_call would still read+write every byte for nothing).
    """
    nbytes = int(x.size) * x.dtype.itemsize
    if donate or nbytes == 0:
        return x
    if not force_kernel and nbytes < _SMALL_BYPASS_BYTES:
        # Small-input bypass: kernel launch + DMA setup dominate; let XLA copy.
        return jnp.copy(x)

    rows, cols = _choose_flat_shape(x)
    flat = x.reshape(rows, cols)
    chunk_bounds = _plan_chunks(rows, cols, flat.dtype.itemsize)

    out = pl.pallas_call(
        functools.partial(_dma_copy_kernel, chunk_bounds=chunk_bounds),
        out_shape=jax.ShapeDtypeStruct(flat.shape, flat.dtype),
        # Raw HBM refs on both sides: no BlockSpec pipeline, no VMEM usage.
        in_specs=[pl.BlockSpec(memory_space=pl.ANY)],
        out_specs=pl.BlockSpec(memory_space=pl.ANY),
        scratch_shapes=[pltpu.SemaphoreType.DMA((len(chunk_bounds),))],
        # Tell XLA this is a pure-bandwidth op so it can schedule around it.
        cost_estimate=pl.CostEstimate(
            flops=0, transcendentals=0, bytes_accessed=2 * nbytes
        ),
    )(flat)
    return out.reshape(x.shape)


class PassThroughEmbedder:
    """JAX/Pallas port of parsytongue PassThroughEmbedder.

    config: {'dim': int, 'input_name': str}; no parameters.

    Default forward is a true identity (returns the input array: zero kernels,
    zero HBM traffic). Set use_pallas_copy=True only if an explicit
    materialized copy / kernel boundary is required.
    """

    NAME = "pass_through"

    def __init__(self, config, use_pallas_copy=False):
        self._dim = int(config["dim"])
        self._input_name = config["input_name"]
        self._use_pallas_copy = use_pallas_copy

    def get_output_size(self):
        return self._dim

    def __call__(self, inputs):
        x = inputs[self._input_name]
        assert x.ndim == 3, (
            "Expected 3D tensor (batch_size, sent_len, embed_dim), found {}".format(
                x.shape
            )
        )
        assert x.shape[-1] == self._dim

        if not self._use_pallas_copy:
            # Fastest correct implementation of an identity: return the input.
            return x
        # Non-donating explicit copy (small inputs fall back to an XLA copy).
        return pass_through_copy(x)


if __name__ == "__main__":
    key = jax.random.PRNGKey(0)
    batch, seq, hidden = 2, 8, 32
    x = jax.random.normal(key, (batch, seq, hidden), dtype=jnp.float32)

    # 1) Default path: pure identity, no kernel launched, no copies.
    embedder = PassThroughEmbedder({"dim": hidden, "input_name": "tokens"})
    y = jax.block_until_ready(embedder({"tokens": x}))
    assert y.shape == x.shape and y.dtype == x.dtype
    assert embedder.get_output_size() == hidden
    assert bool(jnp.array_equal(y, x))

    # 2) Explicit-copy embedder on a tiny input: small-input bypass (XLA copy).
    embedder_copy = PassThroughEmbedder(
        {"dim": hidden, "input_name": "tokens"}, use_pallas_copy=True
    )
    y2 = jax.block_until_ready(embedder_copy({"tokens": x}))
    assert y2.shape == x.shape and y2.dtype == x.dtype
    assert bool(jnp.array_equal(y2, x))

    # 3) Run the Pallas HBM->HBM DMA kernel once on the small input.
    y3 = jax.block_until_ready(pass_through_copy(x, force_kernel=True))
    assert y3.shape == x.shape and y3.dtype == x.dtype
    assert bool(jnp.array_equal(y3, x))

    # 4) Multi-chunk DMA path (overlapped copies) on a modest 2 MiB input.
    x4 = jax.random.normal(jax.random.PRNGKey(0), (8, 128, 512), dtype=jnp.float32)
    y4 = jax.block_until_ready(pass_through_copy(x4, force_kernel=True))
    assert y4.shape == x4.shape and y4.dtype == x4.dtype
    assert bool(jnp.array_equal(y4, x4))

    # 5) Donated buffer: identity is a semantic no-op -> no kernel launched.
    y5 = pass_through_copy(x, donate=True)
    assert y5 is x

    print("KERNEL_OK")
</pallas_src>

<mosaic_0001>
module attributes {stable_mosaic.version = 11 : i64} {
  func.func @_dma_copy_kernel(%arg0: memref<1x512xf32, #tpu.memory_space<any>>, %arg1: memref<1x512xf32, #tpu.memory_space<any>>, %arg2: memref<1x!tpu.dma_semaphore, #tpu.memory_space<semaphore_mem>>) attributes {dimension_semantics = [], scalar_prefetch = 0 : i64, scratch_operands = 1 : i64, tpu.core_type = #tpu.core_type<tc>} {
    %c0_i32 = arith.constant 0 : i32
    %c0_i32_0 = arith.constant 0 : i32
    %c0_i32_1 = arith.constant 0 : i32
    %0 = tpu.memref_slice %arg0[%c0_i32_0, %c0_i32_1] : memref<1x512xf32, #tpu.memory_space<any>> -> memref<1x512xf32, #tpu.memory_space<any>>
    %c0_i32_2 = arith.constant 0 : i32
    %c0_i32_3 = arith.constant 0 : i32
    %1 = tpu.memref_slice %arg1[%c0_i32_2, %c0_i32_3] : memref<1x512xf32, #tpu.memory_space<any>> -> memref<1x512xf32, #tpu.memory_space<any>>
    %2 = tpu.memref_slice %arg2[%c0_i32] : memref<1x!tpu.dma_semaphore, #tpu.memory_space<semaphore_mem>> -> memref<1x!tpu.dma_semaphore, #tpu.memory_space<semaphore_mem>>
    %3 = tpu.memref_squeeze %2 : memref<1x!tpu.dma_semaphore, #tpu.memory_space<semaphore_mem>> -> memref<!tpu.dma_semaphore, #tpu.memory_space<semaphore_mem>>
    tpu.enqueue_dma source(%0 : memref<1x512xf32, #tpu.memory_space<any>>) target(%1 : memref<1x512xf32, #tpu.memory_space<any>>) target_semaphore(%3 : memref<!tpu.dma_semaphore, #tpu.memory_space<semaphore_mem>>)
    %c0_i32_4 = arith.constant 0 : i32
    %c0_i32_5 = arith.constant 0 : i32
    %c0_i32_6 = arith.constant 0 : i32
    %4 = tpu.memref_slice %arg0[%c0_i32_5, %c0_i32_6] : memref<1x512xf32, #tpu.memory_space<any>> -> memref<1x512xf32, #tpu.memory_space<any>>
    %c0_i32_7 = arith.constant 0 : i32
    %c0_i32_8 = arith.constant 0 : i32
    %5 = tpu.memref_slice %arg1[%c0_i32_7, %c0_i32_8] : memref<1x512xf32, #tpu.memory_space<any>> -> memref<1x512xf32, #tpu.memory_space<any>>
    %6 = tpu.memref_slice %arg2[%c0_i32_4] : memref<1x!tpu.dma_semaphore, #tpu.memory_space<semaphore_mem>> -> memref<1x!tpu.dma_semaphore, #tpu.memory_space<semaphore_mem>>
    %7 = tpu.memref_squeeze %6 : memref<1x!tpu.dma_semaphore, #tpu.memory_space<semaphore_mem>> -> memref<!tpu.dma_semaphore, #tpu.memory_space<semaphore_mem>>
    tpu.wait_dma2 semaphore(%7 : memref<!tpu.dma_semaphore, #tpu.memory_space<semaphore_mem>>) src(%4 : memref<1x512xf32, #tpu.memory_space<any>>) dst(%5 : memref<1x512xf32, #tpu.memory_space<any>>)
    return
  }
}

</mosaic_0001>

<bundles_post_ra>
// kernel: tpu_custom_call.1
= control target key start
LH: loop header
LB: loop body
LE: loop exit
PB: predicated region body
PF: predicated region fallthrough
CT: control target
= control target key end

     0   :  { %s34_s6 = smov [#allocation2]   ;;  %s35_s7 = smov [#allocation3]   ;;  %s53_s0 = inlined_call_operand.hbm [shape: f32[1,512], index: 0, kind: input, shape index: {}]   ;;  %s54_s1 = inlined_call_operand.hbm [shape: f32[1,512], index: 1, kind: output, shape index: {}]  }
   0x1   :  { %s36_s8 = smov 0  }
   0x2   :  { %18 = dma.general %s53_s0, 64, %s54_s1, %s34_s6, %s35_s7, [#allocation4], %s36_s8, 0  }
   0x3   :  { %32 = dma.done.wait [#allocation2], 64 }
   0x4   :  { %33 = vsyncadd [#allocation2], 4294967232 }
   0x5   :  { %22 = vsyncmov [#allocation2] }
   0x8   :  { %s23_s13 = vpop.sfrf %22 }
   0x9   :  { %p28_p0 = scmp.ne.s32.totalorder %s23_s13, 0 }
   0xb   :  { %27 = shalt.err (%p28_p0)  }

</bundles_post_ra>
